<compile_context>
chip_gen: v6e
topology: v6e:2x2x1
jax: 0.10.0
libtpu: 0.0.40
codegen_flags: <defaults>
</compile_context>

<pallas_src>
import functools

import jax
import jax.numpy as jnp
from jax.experimental import pallas as pl
from jax.experimental.pallas import tpu as pltpu

_LANE = 128
_MAX_TILE_ROWS = 2048   # (2048,128) f32 = 1 MiB/block -> ~4 MiB double-buffered in+out
_MIN_TILES = 4          # give v7x's two TensorCores >= 2 tiles each when possible


def _choose_tile_rows(rows, sublane):
    if rows < 2 * sublane:
        return rows  # single full-array block (no divisibility constraint then)
    target = pl.cdiv(rows, _MIN_TILES)
    target = pl.cdiv(target, sublane) * sublane  # round up to sublane multiple
    return max(sublane, min(_MAX_TILE_ROWS, target))


def _snp_kernel(seed_ref, img_ref, out_ref, *, flip_thresh, salt_thresh,
                tile_rows, use_hw_prng):
    if use_hw_prng:
        # Per-tile seed keeps every tile's noise distinct and deterministic
        # regardless of which core executes it.
        pltpu.prng_seed(seed_ref[0] + pl.program_id(0))
        bits = pltpu.bitcast(pltpu.prng_random_bits(img_ref.shape), jnp.uint32)
    else:
        # Interpret-mode fallback: cheap counter-based hash of (seed, index).
        shape = img_ref.shape
        row = jax.lax.broadcasted_iota(jnp.uint32, shape, 0)
        col = jax.lax.broadcasted_iota(jnp.uint32, shape, 1)
        base = (seed_ref[0].astype(jnp.uint32) * jnp.uint32(0x9E3779B9)
                + (pl.program_id(0) * (tile_rows * _LANE)).astype(jnp.uint32))
        z = base + (row << jnp.uint32(7)) + col
        z = z ^ (z >> jnp.uint32(16))
        z = z * jnp.uint32(0x7FEB352D)
        z = z ^ (z >> jnp.uint32(15))
        z = z * jnp.uint32(0x846CA68B)
        z = z ^ (z >> jnp.uint32(16))
        bits = z

    # High 16 bits decide "flip", low 16 bits decide "salt vs pepper".
    flipped = (bits >> jnp.uint32(16)) < jnp.uint32(flip_thresh)
    salted = (bits & jnp.uint32(0xFFFF)) < jnp.uint32(salt_thresh)

    img = img_ref[...]
    out_ref[...] = jnp.where(flipped, salted.astype(img.dtype), img)


def salt_n_pepper(img, seed, prop=0.5, amount=0.05):
    """Apply salt & pepper noise to `img` (any shape, float values in [0, 1])."""
    # Match the module's __init__ validation.
    prop = prop if 0.0 < prop <= 1.0 else 0.5
    amount = amount if amount < 1.0 else 0.005

    img = jnp.asarray(img)
    orig_shape = img.shape
    in_dtype = img.dtype

    if in_dtype in (jnp.dtype(jnp.float32), jnp.dtype(jnp.bfloat16)):
        compute_dtype = in_dtype
    else:
        # TODO(synk): skimage's img_as_float rescales integer images to [0,1];
        # non-float inputs here are simply cast to float32.
        compute_dtype = jnp.dtype(jnp.float32)

    flat = img.reshape(-1)
    if flat.dtype != compute_dtype:
        flat = flat.astype(compute_dtype)
    n = flat.shape[0]

    sublane = 8 if compute_dtype.itemsize == 4 else 16
    rows = pl.cdiv(n, _LANE)
    padded = rows * _LANE
    if padded != n:  # only pad when the flat size is not lane-aligned
        flat = jnp.pad(flat, (0, padded - n))
    x2d = flat.reshape(rows, _LANE)

    tile_rows = _choose_tile_rows(rows, sublane)
    num_tiles = pl.cdiv(rows, tile_rows)  # Pallas clips the partial last block

    seed_arr = jnp.array([seed], dtype=jnp.int32)

    # Integer thresholds on 16-bit uniform fields (1/65536 granularity).
    flip_thresh = max(0, min(65536, int(round(float(amount) * 65536.0))))
    salt_thresh = max(0, min(65536, int(round(float(prop) * 65536.0))))

    use_hw_prng = jax.default_backend() == "tpu"

    kernel = functools.partial(
        _snp_kernel,
        flip_thresh=flip_thresh,
        salt_thresh=salt_thresh,
        tile_rows=tile_rows,
        use_hw_prng=use_hw_prng,
    )

    cost = pl.CostEstimate(
        flops=6 * padded,
        transcendentals=0,
        bytes_accessed=2 * padded * compute_dtype.itemsize,
    )

    out2d = pl.pallas_call(
        kernel,
        out_shape=jax.ShapeDtypeStruct((rows, _LANE), compute_dtype),
        grid_spec=pltpu.PrefetchScalarGridSpec(
            num_scalar_prefetch=1,
            grid=(num_tiles,),
            in_specs=[pl.BlockSpec((tile_rows, _LANE), lambda i, seed: (i, 0))],
            out_specs=pl.BlockSpec((tile_rows, _LANE), lambda i, seed: (i, 0)),
        ),
        compiler_params=pltpu.CompilerParams(
            dimension_semantics=("parallel",),
        ),
        cost_estimate=cost,
    )(seed_arr, x2d)

    out_flat = out2d.reshape(-1)
    if padded != n:
        out_flat = out_flat[:n]
    return out_flat.reshape(orig_shape)


if __name__ == "__main__":
    key = jax.random.PRNGKey(0)
    # Small NCHW image with values in [0, 1] (img_as_float convention).
    x = jax.random.uniform(key, (2, 4, 16, 16), dtype=jnp.float32)

    y = salt_n_pepper(x, seed=0, prop=0.5, amount=0.05)
    y = jax.block_until_ready(y)

    # Sanity: same shape/dtype, noised pixels are exactly 0 or 1, untouched
    # pixels equal the input.
    assert y.shape == x.shape and y.dtype == x.dtype
    changed = y != x
    assert bool(jnp.all(jnp.where(changed, (y == 0.0) | (y == 1.0), True)))
    assert bool(jnp.all(jnp.where(~changed, y == x, True)))

    print("KERNEL_OK")
</pallas_src>

<mosaic_0001>
module attributes {stable_mosaic.version = 11 : i64} {
  func.func @_snp_kernel(%arg0: i32, %arg1: memref<1xi32, #tpu.memory_space<smem>>, %arg2: memref<8x128xf32, #tpu.memory_space<vmem>>, %arg3: memref<8x128xf32, #tpu.memory_space<vmem>>) attributes {dimension_semantics = [#tpu.dimension_semantics<parallel>], iteration_bounds = array<i64: 2>, scalar_prefetch = 1 : i64, scratch_operands = 0 : i64, tpu.core_type = #tpu.core_type<tc>, window_params = [{transform_indices = @transform_0, window_bounds = array<i64: 8, 128>}, {transform_indices = @transform_1, window_bounds = array<i64: 8, 128>}]} {
    %0 = tpu.iota {dimensions = array<i32: 0>} : vector<8x128xi32>
    %1 = tpu.iota {dimensions = array<i32: 1>} : vector<8x128xi32>
    %c0 = arith.constant 0 : index
    %2 = memref.load %arg1[%c0] : memref<1xi32, #tpu.memory_space<smem>>
    %c-1640531527_i32 = arith.constant -1640531527 : i32
    %3 = arith.muli %2, %c-1640531527_i32 : i32
    %c1024_i32 = arith.constant 1024 : i32
    %4 = arith.muli %arg0, %c1024_i32 : i32
    %5 = arith.addi %3, %4 : i32
    %c7_i32 = arith.constant 7 : i32
    %6 = vector.broadcast %c7_i32 : i32 to vector<8x128xi32>
    %7 = arith.shli %0, %6 : vector<8x128xi32>
    %8 = vector.broadcast %5 : i32 to vector<8x128xi32>
    %9 = arith.addi %8, %7 : vector<8x128xi32>
    %10 = arith.addi %9, %1 : vector<8x128xi32>
    %c16_i32 = arith.constant 16 : i32
    %11 = vector.broadcast %c16_i32 : i32 to vector<8x128xi32>
    %12 = arith.shrui %10, %11 : vector<8x128xi32>
    %13 = arith.xori %10, %12 : vector<8x128xi32>
    %c2146121005_i32 = arith.constant 2146121005 : i32
    %14 = vector.broadcast %c2146121005_i32 : i32 to vector<8x128xi32>
    %15 = arith.muli %13, %14 : vector<8x128xi32>
    %c15_i32 = arith.constant 15 : i32
    %16 = vector.broadcast %c15_i32 : i32 to vector<8x128xi32>
    %17 = arith.shrui %15, %16 : vector<8x128xi32>
    %18 = arith.xori %15, %17 : vector<8x128xi32>
    %c-2073254261_i32 = arith.constant -2073254261 : i32
    %19 = vector.broadcast %c-2073254261_i32 : i32 to vector<8x128xi32>
    %20 = arith.muli %18, %19 : vector<8x128xi32>
    %c16_i32_0 = arith.constant 16 : i32
    %21 = vector.broadcast %c16_i32_0 : i32 to vector<8x128xi32>
    %22 = arith.shrui %20, %21 : vector<8x128xi32>
    %23 = arith.xori %20, %22 : vector<8x128xi32>
    %c16_i32_1 = arith.constant 16 : i32
    %24 = vector.broadcast %c16_i32_1 : i32 to vector<8x128xi32>
    %25 = arith.shrui %23, %24 : vector<8x128xi32>
    %c3277_i32 = arith.constant 3277 : i32
    %26 = vector.broadcast %c3277_i32 : i32 to vector<8x128xi32>
    %27 = arith.cmpi ult, %25, %26 : vector<8x128xi32>
    %c65535_i32 = arith.constant 65535 : i32
    %28 = vector.broadcast %c65535_i32 : i32 to vector<8x128xi32>
    %29 = arith.andi %23, %28 : vector<8x128xi32>
    %c32768_i32 = arith.constant 32768 : i32
    %30 = vector.broadcast %c32768_i32 : i32 to vector<8x128xi32>
    %31 = arith.cmpi ult, %29, %30 : vector<8x128xi32>
    %c0_2 = arith.constant 0 : index
    %c0_3 = arith.constant 0 : index
    %32 = vector.load %arg2[%c0_2, %c0_3] : memref<8x128xf32, #tpu.memory_space<vmem>>, vector<8x128xf32>
    %33 = arith.extui %31 : vector<8x128xi1> to vector<8x128xi32>
    %34 = arith.sitofp %33 : vector<8x128xi32> to vector<8x128xf32>
    %35 = arith.select %27, %34, %32 : vector<8x128xi1>, vector<8x128xf32>
    %c0_4 = arith.constant 0 : index
    %c0_5 = arith.constant 0 : index
    %36 = vector.load %arg3[%c0_4, %c0_5] : memref<8x128xf32, #tpu.memory_space<vmem>>, vector<8x128xf32>
    tpu.vector_store %arg3[%c0_4, %c0_5], %35 {strides = array<i32>} : memref<8x128xf32, #tpu.memory_space<vmem>>, vector<8x128xf32>,
    return
  }
  func.func @transform_0(%arg0: i32, %arg1: memref<1xi32, #tpu.memory_space<smem>>) -> (i32, i32) {
    %c0_i32 = arith.constant 0 : i32
    %c0_i32_0 = arith.constant 0 : i32
    return %arg0, %c0_i32 : i32, i32
  }
  func.func @transform_1(%arg0: i32, %arg1: memref<1xi32, #tpu.memory_space<smem>>) -> (i32, i32) {
    %c0_i32 = arith.constant 0 : i32
    %c0_i32_0 = arith.constant 0 : i32
    return %arg0, %c0_i32 : i32, i32
  }
}

</mosaic_0001>

<bundles_post_ra>
// kernel: tpu_custom_call.1
= control target key start
LH: loop header
LB: loop body
LE: loop exit
PB: predicated region body
PF: predicated region fallthrough
CT: control target
= control target key end

     0   :  { %s571_s0 = inlined_call_operand.<no memory space> [shape: s32[1], index: 0, kind: input, shape index: {}]   ;;  %s572_s1 = inlined_call_operand.hbm [shape: f32[16,128], index: 1, kind: input, shape index: {}]   ;;  %s573_s2 = inlined_call_operand.hbm [shape: f32[16,128], index: 2, kind: output, shape index: {}]  }
   0x1   :  { %7 = sst [smem:[#allocation3]] %s571_s0 }
   0x2   :  { %8 = vsyncpa [#allocation5], 0 }
   0x3   :  { %10 = vsyncpa [#allocation5 + $0x1], 0 }
   0x4   :  { %11 = vsyncpa [#allocation6], 0 }
   0x5   :  { %13 = vsyncpa [#allocation6 + $0x1], 0  ;;  %s423_s11 = smov 0   ;;  %s425_s12 = smov 0  }
   0x6   :  { %s427_s13 = smov 0   ;;  %s429_s14 = smov 0  }
   0x7 LB: > { %s444_s0 = sadd.s32 4294967295, %s400_s14   ;;  %s247_s15 = sadd.s32 4294967294, %s400_s14   ;;  %s400_s14 = sphi %s429_s14, %s590_s14   ;;  %s396_s13 = sphi %s427_s13, %s589_s13   ;;  %s392_s12 = sphi %s425_s12, %s588_s12   ;;  %s388_s11 = sphi %s423_s11, %s587_s11  }
   0x8   : > { %s448_s16 = sadd.s32 1, %s400_s14   ;;  %s26_s17 = sadd.s32 1, %s396_s13 }
   0x9   : > { %s23_s18 = ssub.s32 %s400_s14, %s448_s16  ;;  %p33_p0 = scmp.ne.s32.totalorder %s396_s13, %s392_s12 }
   0xa   : > { %p24_p1 = scmp.eq.s32.totalorder %s23_s18, 0  ;;  %p34_p2 = scmp.eq.s32.totalorder %s400_s14, 0 }
   0xb   : > { %p39_p3 = scmp.ne.s32.totalorder %s392_s12, %s388_s11  ;;  %p40_p4 = scmp.eq.s32.totalorder %s444_s0, 0 }
   0xc   : > { %s460_s19 = scalar_select %p24_p1, %s396_s13, %s26_s17  }
   0xd   : > { %p462_p5 = por %p34_p2, %p33_p0  ;;  %p466_p6 = por %p40_p4, %p39_p3 }
   0xe   : > { %p63_p7 = scmp.eq.s32.totalorder %s444_s0, 1  ;;  %p69_p8 = scmp.eq.s32.totalorder %s247_s15, 1 }
   0xf   : > { %s577_s21 = scalar_select %p466_p6, 1, 0 }
  0x10   : > { %p273_p10 = scmp.lt.s32.totalorder %s400_s14, 2  ;;  %p473_p11 = por %p63_p7, %p33_p0 }
  0x11   : > { %p477_p12 = por %p69_p8, %p39_p3  ;;  %s89_s24 = sand.u32 1, %s396_s13  }
  0x12   : > { %s578_s22 = scalar_select %p473_p11, 1, 0 }
  0x13   : > { %s579_s23 = scalar_select %p477_p12, 1, 0 }
  0x14   : > { %s251_s25 = sshll.u32 %s400_s14, 7  ;;  %s250_s26 = sshll.u32 %s89_s24, 3 }
  0x15   : > { %s486_s29 = scalar_lea.hbm %s572_s1, %s251_s25  ;;  %s93_s30 = scalar_lea.vmem [#allocation4], %s250_s26 }
  0x16   : > { %s100_s3 = sshll.u32 %s93_s30, 4  ;;  %p490_p13 = pnand %p273_p10, %p462_p5  ;;  %s494_s3 = int_to_ptr.vmem [resolvable:$true] %s100_s3 }
  0x17   : > { %s90_s5 = scalar_lea.sflag [#allocation5], %s89_s24  ;;  %s308_s6 = scalar_lea.hbm %s486_s29, 128 }
  0x18   : > { %p309_p2 = scmp.ne.s32.totalorder %s486_s29, %s308_s6  ;;  %p310_p3 = pneg %p490_p13 }
  0x19   : > { %s313_s9 = scalar_lea.hbm %s572_s1, 256  ;;  %p314_p5 = scmp.lt.s32.totalorder %s486_s29, %s572_s1 }
  0x1a   : > { %p311_p4 = pnand %p310_p3, %p309_p2  ;;  %p315_p8 = scmp.lt.s32.totalorder %s313_s9, %s308_s6 }
  0x1c   : > { %p312_p7 = pneg %p311_p4  ;;  %p316_p10 = por %p315_p8, %p314_p5 }
  0x1e   : > { %p317_p9 = pnand %p316_p10, %p312_p7 }
  0x20   : > { %320 = shalt.err (!%p317_p9)
}
  0x21   : > { %s321_s17 = scalar_lea.vmem %s494_s3, 128  ;;  %s402_s18 = smov [#allocation4]  }
  0x22   : > { %p322_p0 = scmp.ne.s32.totalorder %s494_s3, %s321_s17  ;;  %s326_s20 = sshll.u32 %s402_s18, 4  ;;  %s327_s20 = int_to_ptr.vmem [resolvable:$false] %s326_s20 }
  0x23   : > { %s328_s24 = scalar_lea.vmem %s327_s20, 256  ;;  %p329_p4 = scmp.lt.s32.totalorder %s494_s3, %s327_s20 }
  0x24   : > { %p324_p1 = pnand %p322_p0, %p310_p3  ;;  %p330_p12 = scmp.lt.s32.totalorder %s328_s24, %s321_s17 }
  0x26   : > { %p325_p2 = pneg %p324_p1  ;;  %p331_p11 = por %p330_p12, %p329_p4 }
  0x28   : > { %p332_p6 = pnand %p331_p11, %p325_p2 }
  0x2a   : > { %335 = shalt.err (!%p332_p6)
}
  0x2b   : > { %268 = dma.hbm_to_vmem [thread:$0]  (!%p490_p13), %s486_s29, 128, %s494_s3, %s90_s5  }
  0x2c   : > { %p581_p9 = scmp.lt.s32.totalorder %s400_s14, 3  ;;  %p582_p7 = scmp.ge.s32.totalorder %s400_s14, 1 }
  0x2e   : > { %p106_p0 = pnand %p582_p7, %p581_p9 }
  0x2f   : > { %s521_s25 = sand.u32 (!%p106_p0), 1, %s392_s12   ;;  %p583_p6 = scmp.ne.s32.totalorder (!%p106_p0), %s577_s21, 0 }
  0x30   : > { %109 = sbr.rel (%p106_p0) target bundleno = 102 (0x66), region = 24  ;;  %s253_s26 = sshll.u32 (!%p106_p0), %s521_s25, 3 }
  0x31   : > { %s112_s27 = scalar_lea.sflag (!%p106_p0), [#allocation5], %s521_s25  ;;  %s115_s28 = scalar_lea.vmem (!%p106_p0), [#allocation4], %s253_s26 }
  0x35   : > { %379 = dma.done.wait (%p583_p6), %s112_s27, 128  }
  0x36   : > { %381 = vsyncadd (%p583_p6), %s112_s27, 4294967168  ;;  %v134_v0 = vlaneseq  ;;  %s138_s29 = sld [smem:[#allocation3]]  ;;  %s255_s30 = sshll.u32 %s444_s0, 10  ;;  %v158_v17 = vld [vmem:[%s115_s28] sm:$0xff]  ;;  %v403_v18 = vmov 0.0  }
  0x37   : > { %s133_s21 = scalar_lea.vmem [#allocation7], %s253_s26  ;;  %s258_s6 = sshll.u32 %s444_s0, 7 }
  0x38   : > { %v135_v1 = vshrl.u32 %v134_v0, 7  ;;  %v137_v3 = vand.u32 127, %v134_v0  ;;  %s177_s5 = sshll.u32 %s133_s21, 4  ;;  %s175_s9 = scalar_lea.hbm %s573_s2, %s258_s6  ;;  %s531_s5 = int_to_ptr.vmem [resolvable:$true] %s177_s5 }
  0x39   : > { %s164_s10 = scalar_lea.sflag [#allocation6], %s521_s25  ;;  %s336_s15 = scalar_lea.vmem %s531_s5, 128 }
  0x3a   : > { %v142_v2 = vshll.u32 %v135_v1, 7  ;;  %p337_p11 = scmp.ne.s32.totalorder %s531_s5, %s336_s15  ;;  %p584_p12 = scmp.ne.s32.totalorder %s578_s22, 0 }
  0x3b   : > { %s404_s0 = smov [#allocation7]  }
  0x3c   : > { %s139_s3 = smul.u32 2654435769, %s138_s29  ;;  %p338_p13 = pnand %p337_p11, %p584_p12 }
  0x3d   : > { %s340_s17 = sshll.u32 %s404_s0, 4  ;;  %s341_s17 = int_to_ptr.vmem [resolvable:$false] %s340_s17 }
  0x3e   : > { %s141_s4 = sadd.s32 %s255_s30, %s139_s3  ;;  %p339_p1 = pneg %p338_p13 }
  0x3f   : > { %v143_v4 = vstv %s141_s4  ;;  %s342_s18 = scalar_lea.vmem %s341_s17, 256  ;;  %p343_p3 = scmp.lt.s32.totalorder %s531_s5, %s341_s17 }
  0x40   : > { %v144_v5 = vadd.s32 %v143_v4, %v142_v2  ;;  %p344_p5 = scmp.lt.s32.totalorder %s342_s18, %s336_s15 }
  0x42   : > { %v145_v6 = vadd.s32 %v144_v5, %v137_v3  ;;  %p345_p8 = por %p344_p5, %p343_p3 }
  0x44   : > { %v146_v7 = vshrl.u32 %v145_v6, 16  ;;  %p346_p10 = pnand %p345_p8, %p339_p1 }
  0x46   : > { %v147_v8 = vxor.u32 %v146_v7, %v145_v6 }
  0x48   : > { %v148_v9 = vmul.u32 2146121005, %v147_v8 }
  0x4a   : > { %v149_v10 = vshrl.u32 %v148_v9, 15 }
  0x4c   : > { %v150_v11 = vxor.u32 %v149_v10, %v148_v9 }
  0x4e   : > { %v151_v12 = vmul.u32 2221713035, %v150_v11 }
  0x50   : > { %v152_v13 = vshrl.u32 %v151_v12, 16 }
  0x52   : > { %v153_v14 = vxor.u32 %v152_v13, %v151_v12 }
  0x54   : > { %v154_v15 = vshrl.u32 %v153_v14, 16  ;;  %v156_v16 = vand.u32 65535, %v153_v14 }
  0x56   : > { %vm155_vm0 = vcmp.lt.u32.totalorder %v154_v15, 3277  ;;  %vm157_vm1 = vcmp.lt.u32.totalorder %v156_v16, 32768 }
  0x57   : > { %v256_v19 = vsel %vm157_vm1, 1.0, %v403_v18 }
  0x58   : > { %v161_v20 = vsel %vm155_vm0, %v256_v19, %v158_v17 }
  0x59   : > { %162 = vst [vmem:[%s133_s21] sm:$0xff] %v161_v20 }
  0x5a   : > { %349 = shalt.err (!%p346_p10)
}
  0x5b   : > { %s350_s20 = scalar_lea.hbm %s175_s9, 128  ;;  %s354_s26 = scalar_lea.hbm %s573_s2, 256 }
  0x5c   : > { %p351_p2 = scmp.ne.s32.totalorder %s175_s9, %s350_s20  ;;  %p355_p7 = scmp.lt.s32.totalorder %s175_s9, %s573_s2 }
  0x5d   : > { %p356_p0 = scmp.lt.s32.totalorder %s354_s26, %s350_s20 }
  0x5e   : > { %p352_p4 = pnand %p351_p2, %p584_p12 }
  0x5f   : > { %p357_p6 = por %p356_p0, %p355_p7 }
  0x60   : > { %p353_p9 = pneg %p352_p4 }
  0x62   : > { %p358_p11 = pnand %p357_p6, %p353_p9 }
  0x64   : > { %361 = shalt.err (!%p358_p11)
}
  0x65   : > { %263 = dma.vmem_to_hbm [thread:$0]  (%p584_p12), %s531_s5, 128, %s175_s9, %s164_s10  }
  0x66 PF: > { %s189_s29 = sand.u32 1, %s388_s11   ;;  %p585_p13 = scmp.ne.s32.totalorder %s579_s23, 0 }
  0x67   : > { %p586_p1 = scmp.ge.s32.totalorder %s400_s14, 2  ;;  %s190_s30 = scalar_lea.sflag [#allocation6], %s189_s29 }
  0x69   : > { %p270_p3 = pnand %p586_p1, %p585_p13 }
  0x6b   : > { %p271_p5 = pneg %p270_p3 }
  0x6d   : > { %383 = dma.done.wait (%p271_p5), %s190_s30, 128  }
  0x6e   : > { %385 = vsyncadd (%p271_p5), %s190_s30, 4294967168  ;;  %p16_p8 = scmp.ge.s32.totalorder %s448_s16, 4   ;;  %s587_s11 = smov %s392_s12 }
  0x6f   : > { %s588_s12 = smov %s396_s13  ;;  %s589_s13 = smov %s460_s19 }
  0x70   : > { %s590_s14 = smov %s448_s16  ;;  %18 = sbr.rel (!%p16_p8) target bundleno = 7 (0x7), region = 69 }
  0x75   :  { %195 = vsyncpa [#allocation5], 1 }
  0x76   :  { %197 = vsyncpa [#allocation5 + $0x1], 1 }
  0x77   :  { %198 = vsyncpa [#allocation6], 1 }
  0x78   :  { %200 = vsyncpa [#allocation6 + $0x1], 1 }

</bundles_post_ra>
